<compile_context>
chip_gen: v5e
topology: v5e:2x2
jax: 0.10.0
libtpu: 0.0.40
codegen_flags: <defaults>
</compile_context>

<pallas_src>
import jax
import jax.numpy as jnp
from jax.experimental import pallas as pl
from jax.experimental.pallas import tpu as pltpu

# ----------------------------- configuration ------------------------------- #
RESOLUTION = 16        # stands in for 224
IN_CHANNELS = 3
FEATURE_DIM = 32       # stands in for CLIP's 512-d image features
NUM_CLASSES = 10

D_IN = IN_CHANNELS * RESOLUTION * RESOLUTION   # 768, multiple of 128
K_PAD = 128            # logits padded to a lane-dense width (slice back to 10)

TB = 128               # batch tile: fills the MXU M-dim, multiple of 16 (bf16)

CLIP_MEAN = jnp.array([0.48145466, 0.4578275, 0.40821073], dtype=jnp.float32)
CLIP_STD = jnp.array([0.26862954, 0.26130258, 0.27577711], dtype=jnp.float32)


# ------------------------------ Pallas kernel ------------------------------ #
def clip_probe_kernel(x_ref, w_ref, b_ref, out_ref):
    """logits = x @ W_total + b_total.  Single MXU pass + f32 bias epilogue.

    Normalization, encoder and classifier are all folded into W_total/b_total
    on the host (valid because the encoder stand-in is linear).
    """
    out_ref[...] = (
        jnp.dot(x_ref[...], w_ref[...], preferred_element_type=jnp.float32)
        + b_ref[...]
    )


def _run_kernel(x_bf16, w_total, b_total):
    """x_bf16: (B_pad, D_IN) bf16, B_pad % TB == 0."""
    b_pad = x_bf16.shape[0]
    grid = (b_pad // TB,)
    return pl.pallas_call(
        clip_probe_kernel,
        out_shape=jax.ShapeDtypeStruct((b_pad, K_PAD), jnp.float32),
        grid_spec=pltpu.PrefetchScalarGridSpec(
            num_scalar_prefetch=0,
            grid=grid,
            in_specs=[
                # x tile marches over the batch only; full D is resident.
                pl.BlockSpec((TB, D_IN), lambda i: (i, 0)),
                # folded weight / bias: constant index -> resident, no re-DMA.
                pl.BlockSpec((D_IN, K_PAD), lambda i: (0, 0)),
                pl.BlockSpec((1, K_PAD), lambda i: (0, 0)),
            ],
            out_specs=pl.BlockSpec((TB, K_PAD), lambda i: (i, 0)),
        ),
        compiler_params=pltpu.CompilerParams(
            dimension_semantics=("parallel",),   # batch axis shards across TCs
            vmem_limit_bytes=48 * 1024 * 1024,   # <= v7x's 64 MiB; ample here
        ),
    )(x_bf16, w_total, b_total)


# ------------------------------ parameters --------------------------------- #
def init_params(key):
    k1, k2, k3, k4 = jax.random.split(key, 4)
    w_enc = jax.random.normal(k1, (D_IN, FEATURE_DIM), jnp.float32) * (
        1.0 / jnp.sqrt(D_IN))
    b_enc = jax.random.normal(k2, (1, FEATURE_DIM), jnp.float32) * 0.01
    w_cls = jax.random.normal(k3, (FEATURE_DIM, NUM_CLASSES), jnp.float32) * (
        1.0 / jnp.sqrt(FEATURE_DIM))
    b_cls = jax.random.normal(k4, (1, NUM_CLASSES), jnp.float32) * 0.01
    return dict(w_enc=w_enc, b_enc=b_enc, w_cls=w_cls, b_cls=b_cls)


def fold_and_pad_params(params):
    """Fold CLIP normalization + encoder + classifier into one weight/bias.

    Done ONCE on the host (hoisted out of the forward pass):
      logits = (((x - mean)/std) @ W_e + b_e) @ W_c + b_c
             = x @ [scale*W_e @ W_c] + [(bias @ W_e + b_e) @ W_c + b_c]
    with scale/bias expanded along the NCHW channel-major flattened D axis.
    TODO(synk): only valid for the synthetic linear encoder; a real ViT
    encode_image would keep a separate feature stage.
    """
    hw = RESOLUTION * RESOLUTION
    scale = jnp.repeat(1.0 / CLIP_STD, hw)               # (D_IN,)
    bias = jnp.repeat(-CLIP_MEAN / CLIP_STD, hw)         # (D_IN,)

    w_enc_f = scale[:, None] * params["w_enc"]                       # (D_IN, F)
    b_enc_f = bias[None, :] @ params["w_enc"] + params["b_enc"]      # (1, F)

    w_total = w_enc_f @ params["w_cls"]                              # (D_IN, C)
    b_total = b_enc_f @ params["w_cls"] + params["b_cls"]            # (1, C)

    # Zero-pad the class dim to 128 lanes (unmasked stores, dense MXU N-dim).
    w_total_p = jnp.zeros((D_IN, K_PAD), jnp.float32).at[
        :, :NUM_CLASSES].set(w_total)
    b_total_p = jnp.zeros((1, K_PAD), jnp.float32).at[:, :NUM_CLASSES].set(
        b_total)

    return dict(
        w_total=w_total_p.astype(jnp.bfloat16),   # bf16 MXU operand
        b_total=b_total_p,                        # f32 epilogue
    )


# ------------------------------ model wrapper ------------------------------ #
@jax.jit
def model_wrapper_forward(images, folded):
    """images: (B, C, H, W) float32 NCHW, values in [0, 1]."""
    B, C, _, _ = images.shape
    # --- preprocess glue (Resize + CenterCrop) ---
    # torchvision Resize(res) scales the short side to `res`; CenterCrop(res)
    # then crops to (res, res). For square inputs this is a plain resize.
    # TODO(synk): torchvision bilinear+antialias semantics are approximated by
    # jax.image.resize bilinear.
    resized = jax.image.resize(
        images, (B, C, RESOLUTION, RESOLUTION), method="bilinear")

    # Cast to bf16 BEFORE padding so only bf16 activations hit HBM, then pad
    # the batch to a tile multiple with bf16 zeros.
    x_flat = resized.reshape(B, D_IN).astype(jnp.bfloat16)
    b_pad = ((B + TB - 1) // TB) * TB
    x_pad = jnp.pad(x_flat, ((0, b_pad - B), (0, 0)))

    logits_pad = _run_kernel(x_pad, folded["w_total"], folded["b_total"])
    return logits_pad[:B, :NUM_CLASSES]


# --------------------------------- main ------------------------------------ #
if __name__ == "__main__":
    key = jax.random.PRNGKey(0)
    k_img, k_par = jax.random.split(key)

    # Small NCHW input; larger than RESOLUTION so the resize path is exercised.
    images = jax.random.uniform(k_img, (2, IN_CHANNELS, 32, 32), jnp.float32)
    params = init_params(k_par)
    folded = fold_and_pad_params(params)   # hoisted: built once, reused per call

    logits = model_wrapper_forward(images, folded)
    logits = jax.block_until_ready(logits)

    # Pure-JAX f32 reference (normalize -> encoder -> classifier, unfolded).
    resized = jax.image.resize(
        images, (2, IN_CHANNELS, RESOLUTION, RESOLUTION), method="bilinear")
    xn = (resized - CLIP_MEAN[None, :, None, None]) / CLIP_STD[None, :, None, None]
    feats = xn.reshape(2, -1) @ params["w_enc"] + params["b_enc"]
    ref = feats @ params["w_cls"] + params["b_cls"]

    assert logits.shape == (2, NUM_CLASSES)
    # bf16 matmul operands (f32 accumulation) -> ~1e-2 absolute error on O(1)
    # logits; 5e-2 tolerance as in the two-matmul version.
    assert jnp.allclose(logits, ref, atol=5e-2, rtol=5e-2)
    print("KERNEL_OK")
</pallas_src>

<mosaic_0001>
module attributes {stable_mosaic.version = 11 : i64} {
  func.func @clip_probe_kernel(%arg0: i32, %arg1: memref<128x768xbf16, #tpu.memory_space<vmem>>, %arg2: memref<768x128xbf16, #tpu.memory_space<vmem>>, %arg3: memref<1x128xf32, #tpu.memory_space<vmem>>, %arg4: memref<128x128xf32, #tpu.memory_space<vmem>>) attributes {dimension_semantics = [#tpu.dimension_semantics<parallel>], iteration_bounds = array<i64: 1>, scalar_prefetch = 0 : i64, scratch_operands = 0 : i64, tpu.core_type = #tpu.core_type<tc>, window_params = [{transform_indices = @transform_0, window_bounds = array<i64: 128, 768>}, {pipeline_mode = #tpu.pipeline_mode<synchronous>, transform_indices = @transform_1, window_bounds = array<i64: 768, 128>}, {pipeline_mode = #tpu.pipeline_mode<synchronous>, transform_indices = @transform_2, window_bounds = array<i64: 1, 128>}, {transform_indices = @transform_3, window_bounds = array<i64: 128, 128>}]} {
    %c0 = arith.constant 0 : index
    %c0_0 = arith.constant 0 : index
    %0 = vector.load %arg1[%c0, %c0_0] : memref<128x768xbf16, #tpu.memory_space<vmem>>, vector<128x768xbf16>
    %c0_1 = arith.constant 0 : index
    %c0_2 = arith.constant 0 : index
    %1 = vector.load %arg2[%c0_1, %c0_2] : memref<768x128xbf16, #tpu.memory_space<vmem>>, vector<768x128xbf16>
    %cst = arith.constant dense<0.000000e+00> : vector<128x128xf32>
    %2 = tpu.matmul %0, %1, %cst {dimension_numbers = #tpu.dot_dimension_numbers<[1], [0], [0], [1], [0, 0, 1, 1], [], []>} : vector<128x768xbf16>, vector<768x128xbf16>, vector<128x128xf32> -> vector<128x128xf32>
    %c0_3 = arith.constant 0 : index
    %c0_4 = arith.constant 0 : index
    %3 = vector.load %arg3[%c0_3, %c0_4] : memref<1x128xf32, #tpu.memory_space<vmem>>, vector<1x128xf32>
    %4 = vector.broadcast %3 : vector<1x128xf32> to vector<128x128xf32>
    %5 = arith.addf %2, %4 : vector<128x128xf32>
    %c0_5 = arith.constant 0 : index
    %c0_6 = arith.constant 0 : index
    %6 = vector.load %arg4[%c0_5, %c0_6] : memref<128x128xf32, #tpu.memory_space<vmem>>, vector<128x128xf32>
    tpu.vector_store %arg4[%c0_5, %c0_6], %5 {strides = array<i32>} : memref<128x128xf32, #tpu.memory_space<vmem>>, vector<128x128xf32>,
    return
  }
  func.func @transform_0(%arg0: i32) -> (i32, i32) {
    %c0_i32 = arith.constant 0 : i32
    %c0_i32_0 = arith.constant 0 : i32
    return %arg0, %c0_i32 : i32, i32
  }
  func.func @transform_1(%arg0: i32) -> (i32, i32) {
    %c0_i32 = arith.constant 0 : i32
    %c0_i32_0 = arith.constant 0 : i32
    %c0_i32_1 = arith.constant 0 : i32
    return %c0_i32, %c0_i32_0 : i32, i32
  }
  func.func @transform_2(%arg0: i32) -> (i32, i32) {
    %c0_i32 = arith.constant 0 : i32
    %c0_i32_0 = arith.constant 0 : i32
    %c0_i32_1 = arith.constant 0 : i32
    return %c0_i32, %c0_i32_0 : i32, i32
  }
  func.func @transform_3(%arg0: i32) -> (i32, i32) {
    %c0_i32 = arith.constant 0 : i32
    %c0_i32_0 = arith.constant 0 : i32
    return %arg0, %c0_i32 : i32, i32
  }
}

</mosaic_0001>

<bundles_post_ra>
// kernel: model_wrapper_forward.1
= control target key start
LH: loop header
LB: loop body
LE: loop exit
PB: predicated region body
PF: predicated region fallthrough
CT: control target
= control target key end

     0   :  { %s2094_s1 = inlined_call_operand.vmem [shape: bf16[768,128], index: 1, kind: input, shape index: {}]   ;;  %s2095_s2 = inlined_call_operand.vmem [shape: f32[1,128], index: 2, kind: input, shape index: {}]   ;;  %s2096_s0 = inlined_call_operand.vmem [shape: bf16[128,768], index: 0, kind: input, shape index: {}]   ;;  %s2097_s3 = inlined_call_operand.vmem [shape: f32[128,128], index: 3, kind: output, shape index: {}]  }
   0x1   :  { %v1443_v0 = vld [vmem:[%s2094_s1 + $0x38] sm:$0xff]  ;;  %v1442_v2 = vld [vmem:[%s2094_s1 + $0x30] sm:$0xff]  ;;  %v1441_v4 = vld [vmem:[%s2094_s1 + $0x28] sm:$0xff] }
   0x2   :  { %v1451_v1 = vld [vmem:[%s2094_s1 + $0x78] sm:$0xff]  ;;  %1484 = vmatpush.bf16.msra.mxu2 %v1443_v0  ;;  %v1450_v3 = vld [vmem:[%s2094_s1 + $0x70] sm:$0xff]  ;;  %690 = vmatpush.bf16.msra.mxu0 %v1443_v0  ;;  %v1449_v5 = vld [vmem:[%s2094_s1 + $0x68] sm:$0xff] }
   0x3   :  { %1492 = vmatpush.bf16.msra.mxu3 %v1451_v1  ;;  %739 = vmatpush.bf16.msra.mxu1 %v1451_v1  ;;  %v1440_v6 = vld [vmem:[%s2094_s1 + $0x20] sm:$0xff]  ;;  %v1439_v8 = vld [vmem:[%s2094_s1 + $0x18] sm:$0xff]  ;;  %v1438_v10 = vld [vmem:[%s2094_s1 + $0x10] sm:$0xff] }
   0x4   :  { %v1448_v7 = vld [vmem:[%s2094_s1 + $0x60] sm:$0xff]  ;;  %v1447_v9 = vld [vmem:[%s2094_s1 + $0x58] sm:$0xff]  ;;  %v1446_v11 = vld [vmem:[%s2094_s1 + $0x50] sm:$0xff] }
   0x5   :  { %v1437_v12 = vld [vmem:[%s2094_s1 + $0x8] sm:$0xff]  ;;  %v1436_v14 = vld [vmem:[%s2094_s1] sm:$0xff]  ;;  %v1415_v17 = vld [vmem:[%s2096_s0 + $0xd4] sm:$0xf0] }
   0x6   :  { %1485 = vmatpush.bf16.msra.mxu2 %v1442_v2  ;;  %691 = vmatpush.bf16.msra.mxu0 %v1442_v2  ;;  %v1445_v13 = vld [vmem:[%s2094_s1 + $0x48] sm:$0xff]  ;;  %v1444_v15 = vld [vmem:[%s2094_s1 + $0x40] sm:$0xff]  ;;  %v1104_v19 = vld [vmem:[%s2096_s0 + $0xd8] sm:$0xf0] }
   0x7   :  { %1493 = vmatpush.bf16.msra.mxu3 %v1450_v3  ;;  %740 = vmatpush.bf16.msra.mxu1 %v1450_v3  ;;  %v1102_v16 = vld [vmem:[%s2096_s0 + $0xc0] sm:$0xf]  ;;  %v1412_v18 = vld [vmem:[%s2096_s0 + $0xc4] sm:$0xf]  ;;  %v1459_v20 = vld [vmem:[%s2094_s1 + $0xb8] sm:$0xff] }
   0x8   :  { %v1006_v21 = vld [vmem:[%s2096_s0] sm:$0xf]  ;;  %v1391_v22 = vld [vmem:[%s2096_s0 + $0x14] sm:$0xf0]  ;;  %v1388_v24 = vld [vmem:[%s2096_s0 + $0x4] sm:$0xf]  ;;  %v1103_v26 = vor.u32 %v1415_v17, %v1102_v16  ;;  %v1107_v27 = vor.u32 %v1412_v18, %v1104_v19 }
   0x9   :  { %v1467_v23 = vld [vmem:[%s2094_s1 + $0xf8] sm:$0xff]  ;;  %v1007_v28 = vor.u32 %v1391_v22, %v1006_v21  ;;  %v1458_v31 = vld [vmem:[%s2094_s1 + $0xb0] sm:$0xff]  ;;  %v1457_v35 = vld [vmem:[%s2094_s1 + $0xa8] sm:$0xff] }
   0xa   :  { %1486 = vmatpush.bf16.msra.mxu2 %v1441_v4  ;;  %692 = vmatpush.bf16.msra.mxu0 %v1441_v4  ;;  %v1008_v25 = vld [vmem:[%s2096_s0 + $0x18] sm:$0xf0]  ;;  %v1466_v32 = vld [vmem:[%s2094_s1 + $0xf0] sm:$0xff]  ;;  %v1465_v36 = vld [vmem:[%s2094_s1 + $0xe8] sm:$0xff] }
   0xb   :  { %1494 = vmatpush.bf16.msra.mxu3 %v1449_v5  ;;  %741 = vmatpush.bf16.msra.mxu1 %v1449_v5  ;;  %v1483_v29 = vld [vmem:[%s2094_s1 + $0x178] sm:$0xff]  ;;  %v1011_v30 = vor.u32 %v1388_v24, %v1008_v25  ;;  %v1482_v34 = vld [vmem:[%s2094_s1 + $0x170] sm:$0xff]  ;;  %v1481_v38 = vld [vmem:[%s2094_s1 + $0x168] sm:$0xff] }
   0xc   :  { %v1475_v33 = vld [vmem:[%s2094_s1 + $0x138] sm:$0xff]  ;;  %v1474_v37 = vld [vmem:[%s2094_s1 + $0x130] sm:$0xff]  ;;  %v1456_v39 = vld [vmem:[%s2094_s1 + $0xa0] sm:$0xff] }
   0xd   :  { %v1464_v40 = vld [vmem:[%s2094_s1 + $0xe0] sm:$0xff]  ;;  %v1473_v41 = vld [vmem:[%s2094_s1 + $0x128] sm:$0xff]  ;;  %v1126_v42 = vld [vmem:[%s2096_s0 + $0xf0] sm:$0xf] }
   0xe   :  { %1487 = vmatpush.bf16.msra.mxu2 %v1440_v6  ;;  %693 = vmatpush.bf16.msra.mxu0 %v1440_v6  ;;  %v1421_v43 = vld [vmem:[%s2096_s0 + $0x104] sm:$0xf0]  ;;  %v1418_v44 = vld [vmem:[%s2096_s0 + $0xf4] sm:$0xf]  ;;  %v1128_v45 = vld [vmem:[%s2096_s0 + $0x108] sm:$0xf0] }
   0xf   :  { %1495 = vmatpush.bf16.msra.mxu3 %v1448_v7  ;;  %742 = vmatpush.bf16.msra.mxu1 %v1448_v7  ;;  %v1030_v46 = vld [vmem:[%s2096_s0 + $0x30] sm:$0xf]  ;;  %v1480_v47 = vld [vmem:[%s2094_s1 + $0x160] sm:$0xff]  ;;  %v1397_v48 = vld [vmem:[%s2096_s0 + $0x44] sm:$0xf0]  ;;  %v1127_v54 = vor.u32 %v1421_v43, %v1126_v42  ;;  %v1131_v55 = vor.u32 %v1418_v44, %v1128_v45 }
  0x10   :  { %v1394_v49 = vld [vmem:[%s2096_s0 + $0x34] sm:$0xf]  ;;  %v1455_v50 = vld [vmem:[%s2094_s1 + $0x98] sm:$0xff]  ;;  %v1032_v51 = vld [vmem:[%s2096_s0 + $0x48] sm:$0xf0]  ;;  %v1031_v56 = vor.u32 %v1397_v48, %v1030_v46 }
  0x11   :  { %v1463_v52 = vld [vmem:[%s2094_s1 + $0xd8] sm:$0xff]  ;;  %v1472_v53 = vld [vmem:[%s2094_s1 + $0x120] sm:$0xff]  ;;  %v1035_v58 = vor.u32 %v1394_v49, %v1032_v51  ;;  %v1454_v59 = vld [vmem:[%s2094_s1 + $0x90] sm:$0xff] }
  0x12   :  { %1488 = vmatpush.bf16.msra.mxu2 %v1439_v8  ;;  %694 = vmatpush.bf16.msra.mxu0 %v1439_v8  ;;  %v1479_v57 = vld [vmem:[%s2094_s1 + $0x158] sm:$0xff]  ;;  %v1462_v60 = vld [vmem:[%s2094_s1 + $0xd0] sm:$0xff]  ;;  %v1453_v62 = vld [vmem:[%s2094_s1 + $0x88] sm:$0xff] }
  0x13   :  { %1496 = vmatpush.bf16.msra.mxu3 %v1447_v9  ;;  %743 = vmatpush.bf16.msra.mxu1 %v1447_v9  ;;  %v1471_v61 = vld [vmem:[%s2094_s1 + $0x118] sm:$0xff]  ;;  %v1478_v63 = vld [vmem:[%s2094_s1 + $0x150] sm:$0xff]  ;;  %v1461_v0 = vld [vmem:[%s2094_s1 + $0xc8] sm:$0xff] }
  0x14   :  { %v1470_v1 = vld [vmem:[%s2094_s1 + $0x110] sm:$0xff]  ;;  %v1477_v2 = vld [vmem:[%s2094_s1 + $0x148] sm:$0xff]  ;;  %v1452_v3 = vld [vmem:[%s2094_s1 + $0x80] sm:$0xff] }
  0x15   :  { %v1460_v4 = vld [vmem:[%s2094_s1 + $0xc0] sm:$0xff]  ;;  %v1469_v5 = vld [vmem:[%s2094_s1 + $0x108] sm:$0xff]  ;;  %v1427_v7 = vld [vmem:[%s2096_s0 + $0x134] sm:$0xf0] }
  0x16   :  { %1489 = vmatpush.bf16.msra.mxu2 %v1438_v10  ;;  %695 = vmatpush.bf16.msra.mxu0 %v1438_v10  ;;  %v1150_v6 = vld [vmem:[%s2096_s0 + $0x120] sm:$0xf]  ;;  %v1424_v8 = vld [vmem:[%s2096_s0 + $0x124] sm:$0xf]  ;;  %v1152_v9 = vld [vmem:[%s2096_s0 + $0x138] sm:$0xf0] }
  0x17   :  { %1497 = vmatpush.bf16.msra.mxu3 %v1446_v11  ;;  %744 = vmatpush.bf16.msra.mxu1 %v1446_v11  ;;  %v1054_v10 = vld [vmem:[%s2096_s0 + $0x60] sm:$0xf]  ;;  %v1403_v11 = vld [vmem:[%s2096_s0 + $0x74] sm:$0xf0]  ;;  %v1155_v16 = vor.u32 %v1424_v8, %v1152_v9  ;;  %v1433_v21 = vld [vmem:[%s2096_s0 + $0x164] sm:$0xf0] }
  0x18   :  { %v1055_v17 = vor.u32 %v1403_v11, %v1054_v10  ;;  %v1476_v19 = vld [vmem:[%s2094_s1 + $0x140] sm:$0xff]  ;;  %v1430_v22 = vld [vmem:[%s2096_s0 + $0x154] sm:$0xf]  ;;  %v1078_v24 = vld [vmem:[%s2096_s0 + $0x90] sm:$0xf] }
  0x19   :  { %v1409_v25 = vld [vmem:[%s2096_s0 + $0xa4] sm:$0xf0]  ;;  %v1038_v44 = vld [vmem:[%s2096_s0 + $0x38] sm:$0xf]  ;;  %v1398_v45 = vld [vmem:[%s2096_s0 + $0x4c] sm:$0xf0] }
  0x1a   :  { %1490 = vmatpush.bf16.msra.mxu2 %v1437_v12  ;;  %696 = vmatpush.bf16.msra.mxu0 %v1437_v12  ;;  %v1400_v12 = vld [vmem:[%s2096_s0 + $0x64] sm:$0xf]  ;;  %v1395_v46 = vld [vmem:[%s2096_s0 + $0x3c] sm:$0xf]  ;;  %v1046_v48 = vld [vmem:[%s2096_s0 + $0x40] sm:$0xf] }
  0x1b   :  { %1498 = vmatpush.bf16.msra.mxu3 %v1445_v13  ;;  %745 = vmatpush.bf16.msra.mxu1 %v1445_v13  ;;  %v1056_v13 = vld [vmem:[%s2096_s0 + $0x78] sm:$0xf0]  ;;  %v1399_v49 = vld [vmem:[%s2096_s0 + $0x54] sm:$0xf0]  ;;  %v1094_v8 = vld [vmem:[%s2096_s0 + $0xa0] sm:$0xf] }
  0x1c   :  { %v1059_v18 = vor.u32 %v1400_v12, %v1056_v13  ;;  %v1048_v51 = vld [vmem:[%s2096_s0 + $0x58] sm:$0xf0]  ;;  %v1411_v9 = vld [vmem:[%s2096_s0 + $0xb4] sm:$0xf0]  ;;  %v1408_v10 = vld [vmem:[%s2096_s0 + $0xa4] sm:$0xf] }
  0x1d   :  { %v1096_v11 = vld [vmem:[%s2096_s0 + $0xb8] sm:$0xf0] }
  0x1e   :  { %1491 = vmatpush.bf16.msra.mxu2 %v1436_v14  ;;  %697 = vmatpush.bf16.msra.mxu0 %v1436_v14  ;;  %v1468_v14 = vld [vmem:[%s2094_s1 + $0x100] sm:$0xff] }
  0x1f   :  { %1499 = vmatpush.bf16.msra.mxu3 %v1444_v15  ;;  %746 = vmatpush.bf16.msra.mxu1 %v1444_v15  ;;  %v1151_v15 = vor.u32 %v1427_v7, %v1150_v6  ;;  %v1407_v6 = vld [vmem:[%s2096_s0 + $0x9c] sm:$0xf]  ;;  %v1088_v7 = vld [vmem:[%s2096_s0 + $0xb0] sm:$0xf0] }
  0x20   :  { %v1091_v13 = vor.u32 %v1407_v6, %v1088_v7  ;;  %v1168_v6 = vld [vmem:[%s2096_s0 + $0x148] sm:$0xf0] }
  0x21   :  { %718 = vmatmul.bf16.vlgmr.msra.gmra.mxu2 %v1103_v26  ;;  %698 = vmatmul.bf16.vlgmr.msra.gmra.mxu0 %v1007_v28  ;;  %v1406_v26 = vld [vmem:[%s2096_s0 + $0x94] sm:$0xf] }
  0x22   :  { %788 = vmatpush.bf16.msrb.mxu2 %v1459_v20  ;;  %767 = vmatmul.bf16.vlgmr.msra.gmra.mxu3 %v1107_v27  ;;  %v1174_v20 = vld [vmem:[%s2096_s0 + $0x150] sm:$0xf]  ;;  %v1080_v27 = vld [vmem:[%s2096_s0 + $0xa8] sm:$0xf0] }
  0x23   :  { %837 = vmatpush.bf16.msrb.mxu3 %v1467_v23  ;;  %935 = vmatpush.bf16.msrb.mxu1 %v1483_v29  ;;  %v1176_v23 = vld [vmem:[%s2096_s0 + $0x168] sm:$0xf0]  ;;  %v1175_v28 = vor.u32 %v1433_v21, %v1174_v20  ;;  %v1118_v20 = vld [vmem:[%s2096_s0 + $0xd0] sm:$0xf]  ;;  %v1417_v21 = vld [vmem:[%s2096_s0 + $0xe4] sm:$0xf0] }
  0x24   :  { %747 = vmatmul.bf16.vlgmr.msra.gmra.mxu1 %v1011_v30  ;;  %886 = vmatpush.bf16.msrb.mxu0 %v1475_v33  ;;  %v1179_v29 = vor.u32 %v1430_v22, %v1176_v23  ;;  %v1079_v30 = vor.u32 %v1409_v25, %v1078_v24  ;;  %v1392_v33 = vld [vmem:[%s2096_s0 + $0x1c] sm:$0xf0]  ;;  %v1414_v22 = vld [vmem:[%s2096_s0 + $0xd4] sm:$0xf]  ;;  %v1120_v23 = vld [vmem:[%s2096_s0 + $0xe8] sm:$0xf0] }
  0x26   :  { %789 = vmatpush.bf16.msrb.mxu2 %v1458_v31  ;;  %v1083_v31 = vor.u32 %v1406_v26, %v1080_v27  ;;  %v1119_v26 = vor.u32 %v1417_v21, %v1118_v20  ;;  %v1182_v21 = vld [vmem:[%s2096_s0 + $0x158] sm:$0xf] }
  0x27   :  { %838 = vmatpush.bf16.msrb.mxu3 %v1466_v32  ;;  %936 = vmatpush.bf16.msrb.mxu1 %v1482_v34  ;;  %v1014_v32 = vld [vmem:[%s2096_s0 + $0x8] sm:$0xf]  ;;  %v1389_v34 = vld [vmem:[%s2096_s0 + $0xc] sm:$0xf] }
  0x28   :  { %887 = vmatpush.bf16.msrb.mxu0 %v1474_v37  ;;  %v1393_v37 = vld [vmem:[%s2096_s0 + $0x24] sm:$0xf0] }
  0x2a   :  { %790 = vmatpush.bf16.msrb.mxu2 %v1457_v35  ;;  %v1016_v35 = vld [vmem:[%s2096_s0 + $0x20] sm:$0xf0] }
  0x2b   :  { %839 = vmatpush.bf16.msrb.mxu3 %v1465_v36  ;;  %937 = vmatpush.bf16.msrb.mxu1 %v1481_v38  ;;  %v1022_v36 = vld [vmem:[%s2096_s0 + $0x10] sm:$0xf]  ;;  %v1390_v38 = vld [vmem:[%s2096_s0 + $0x14] sm:$0xf] }
  0x2c   :  { %888 = vmatpush.bf16.msrb.mxu0 %v1473_v41  ;;  %v1019_v41 = vor.u32 %v1389_v34, %v1016_v35  ;;  %v1023_v42 = vor.u32 %v1393_v37, %v1022_v36  ;;  %v1134_v37 = vld [vmem:[%s2096_s0 + $0xf8] sm:$0xf] }
  0x2e   :  { %791 = vmatpush.bf16.msrb.mxu2 %v1456_v39  ;;  %v1024_v39 = vld [vmem:[%s2096_s0 + $0x28] sm:$0xf0] }
  0x2f   :  { %840 = vmatpush.bf16.msrb.mxu3 %v1464_v40  ;;  %938 = vmatpush.bf16.msrb.mxu1 %v1480_v47  ;;  %v1015_v40 = vor.u32 %v1392_v33, %v1014_v32  ;;  %v1027_v43 = vor.u32 %v1390_v38, %v1024_v39  ;;  %v1040_v47 = vld [vmem:[%s2096_s0 + $0x50] sm:$0xf0]  ;;  %v1422_v38 = vld [vmem:[%s2096_s0 + $0x10c] sm:$0xf0]  ;;  %v1419_v39 = vld [vmem:[%s2096_s0 + $0xfc] sm:$0xf] }
  0x30   :  { %889 = vmatpush.bf16.msrb.mxu0 %v1472_v53  ;;  %v1043_v53 = vor.u32 %v1395_v46, %v1040_v47  ;;  %v1144_v46 = vld [vmem:[%s2096_s0 + $0x118] sm:$0xf0] }
  0x31   :  { %723 = vmatmul.bf16.gmra.mxu2 %v1127_v54  ;;  %703 = vmatmul.bf16.gmra.mxu0 %v1031_v56  ;;  %v1047_v54 = vor.u32 %v1399_v49, %v1046_v48  ;;  %v1062_v56 = vld [vmem:[%s2096_s0 + $0x68] sm:$0xf]  ;;  %v1135_v48 = vor.u32 %v1422_v38, %v1134_v37 }
  0x32   :  { %792 = vmatpush.bf16.msrb.mxu2 %v1455_v50  ;;  %772 = vmatmul.bf16.gmra.mxu3 %v1131_v55  ;;  %v1396_v50 = vld [vmem:[%s2096_s0 + $0x44] sm:$0xf] }
  0x33   :  { %841 = vmatpush.bf16.msrb.mxu3 %v1463_v52  ;;  %939 = vmatpush.bf16.msrb.mxu1 %v1479_v57  ;;  %v1039_v52 = vor.u32 %v1398_v45, %v1038_v44  ;;  %v1051_v55 = vor.u32 %v1396_v50, %v1048_v51  ;;  %v1404_v57 = vld [vmem:[%s2096_s0 + $0x7c] sm:$0xf0]  ;;  %v1420_v45 = vld [vmem:[%s2096_s0 + $0x104] sm:$0xf] }
  0x34   :  { %752 = vmatmul.bf16.gmra.mxu1 %v1035_v58  ;;  %890 = vmatpush.bf16.msrb.mxu0 %v1471_v61  ;;  %v1401_v58 = vld [vmem:[%s2096_s0 + $0x6c] sm:$0xf]  ;;  %v1405_v61 = vld [vmem:[%s2096_s0 + $0x84] sm:$0xf0] }
  0x36   :  { %793 = vmatpush.bf16.msrb.mxu2 %v1454_v59  ;;  %v1064_v59 = vld [vmem:[%s2096_s0 + $0x80] sm:$0xf0] }
  0x37   :  { %842 = vmatpush.bf16.msrb.mxu3 %v1462_v60  ;;  %940 = vmatpush.bf16.msrb.mxu1 %v1478_v63  ;;  %v1070_v60 = vld [vmem:[%s2096_s0 + $0x70] sm:$0xf]  ;;  %v1072_v63 = vld [vmem:[%s2096_s0 + $0x88] sm:$0xf0] }
  0x38   :  { %891 = vmatpush.bf16.msrb.mxu0 %v1470_v1  ;;  %v1067_v1 = vor.u32 %v1401_v58, %v1064_v59 }
  0x3a   :  { %794 = vmatpush.bf16.msrb.mxu2 %v1453_v62  ;;  %v1402_v62 = vld [vmem:[%s2096_s0 + $0x74] sm:$0xf] }
  0x3b   :  { %843 = vmatpush.bf16.msrb.mxu3 %v1461_v0  ;;  %941 = vmatpush.bf16.msrb.mxu1 %v1477_v2  ;;  %v1063_v0 = vor.u32 %v1404_v57, %v1062_v56  ;;  %v1071_v2 = vor.u32 %v1405_v61, %v1070_v60  ;;  %v1158_v61 = vld [vmem:[%s2096_s0 + $0x128] sm:$0xf] }
  0x3c   :  { %892 = vmatpush.bf16.msrb.mxu0 %v1469_v5  ;;  %v1410_v5 = vld [vmem:[%s2096_s0 + $0xac] sm:$0xf0] }
  0x3e   :  { %795 = vmatpush.bf16.msrb.mxu2 %v1452_v3  ;;  %v1075_v3 = vor.u32 %v1402_v62, %v1072_v63  ;;  %v1428_v62 = vld [vmem:[%s2096_s0 + $0x13c] sm:$0xf0]  ;;  %v1425_v63 = vld [vmem:[%s2096_s0 + $0x12c] sm:$0xf] }
  0x3f   :  { %844 = vmatpush.bf16.msrb.mxu3 %v1460_v4  ;;  %942 = vmatpush.bf16.msrb.mxu1 %v1476_v19  ;;  %v1086_v4 = vld [vmem:[%s2096_s0 + $0x98] sm:$0xf]  ;;  %v1112_v19 = vld [vmem:[%s2096_s0 + $0xe0] sm:$0xf0] }
  0x40   :  { %893 = vmatpush.bf16.msrb.mxu0 %v1468_v14  ;;  %v1087_v12 = vor.u32 %v1410_v5, %v1086_v4  ;;  %v1095_v14 = vor.u32 %v1411_v9, %v1094_v8  ;;  %v1426_v5 = vld [vmem:[%s2096_s0 + $0x134] sm:$0xf]  ;;  %v1159_v8 = vor.u32 %v1428_v62, %v1158_v61 }
  0x41   :  { %728 = vmatmul.bf16.gmra.mxu2 %v1151_v15  ;;  %708 = vmatmul.bf16.gmra.mxu0 %v1055_v17  ;;  %v1099_v15 = vor.u32 %v1408_v10, %v1096_v11  ;;  %v1416_v17 = vld [vmem:[%s2096_s0 + $0xdc] sm:$0xf0] }
  0x42   :  { %777 = vmatmul.bf16.gmra.mxu3 %v1155_v16  ;;  %v1110_v16 = vld [vmem:[%s2096_s0 + $0xc8] sm:$0xf] }
  0x43   :  { %v1111_v24 = vor.u32 %v1416_v17, %v1110_v16 }
  0x44   :  { %757 = vmatmul.bf16.gmra.mxu1 %v1059_v18  ;;  %v1413_v18 = vld [vmem:[%s2096_s0 + $0xcc] sm:$0xf] }
  0x45   :  { %v1115_v25 = vor.u32 %v1413_v18, %v1112_v19 }
  0x51   :  { %733 = vmatmul.bf16.gmra.mxu2 %v1175_v28  ;;  %713 = vmatmul.bf16.gmra.mxu0 %v1079_v30  ;;  %v1123_v28 = vor.u32 %v1414_v22, %v1120_v23  ;;  %v1888_v30 = vld [vmem:[%s2095_s2] ss:$0 sm:$0xff]  ;;  %v1434_v22 = vld [vmem:[%s2096_s0 + $0x16c] sm:$0xf0]  ;;  %v1431_v23 = vld [vmem:[%s2096_s0 + $0x15c] sm:$0xf] }
  0x52   :  { %782 = vmatmul.bf16.gmra.mxu3 %v1179_v29  ;;  %v1183_v38 = vor.u32 %v1434_v22, %v1182_v21 }
  0x54   :  { %762 = vmatmul.bf16.gmra.mxu1 %v1083_v31 }
  0x61   :  { %796 = vmatmul.bf16.vlgmr.msrb.gmra.mxu2 %v1015_v40  ;;  %894 = vmatmul.bf16.vlgmr.msrb.gmra.mxu0 %v1023_v42  ;;  %v1136_v40 = vld [vmem:[%s2096_s0 + $0x110] sm:$0xf0]  ;;  %v1423_v42 = vld [vmem:[%s2096_s0 + $0x114] sm:$0xf0] }
  0x62   :  { %845 = vmatmul.bf16.vlgmr.msrb.gmra.mxu3 %v1019_v41  ;;  %v1142_v41 = vld [vmem:[%s2096_s0 + $0x100] sm:$0xf]  ;;  %v1139_v49 = vor.u32 %v1419_v39, %v1136_v40 }
  0x63   :  { %v1143_v50 = vor.u32 %v1423_v42, %v1142_v41 }
  0x64   :  { %943 = vmatmul.bf16.vlgmr.msrb.gmra.mxu1 %v1027_v43 }
  0x71   :  { %801 = vmatmul.bf16.gmra.mxu2 %v1039_v52  ;;  %899 = vmatmul.bf16.gmra.mxu0 %v1047_v54 }
  0x72   :  { %850 = vmatmul.bf16.gmra.mxu3 %v1043_v53  ;;  %v1147_v53 = vor.u32 %v1420_v45, %v1144_v46 }
  0x74   :  { %948 = vmatmul.bf16.gmra.mxu1 %v1051_v55 }
  0x81   :  { %806 = vmatmul.bf16.gmra.mxu2 %v1063_v0  ;;  %904 = vmatmul.bf16.gmra.mxu0 %v1071_v2  ;;  %v1160_v0 = vld [vmem:[%s2096_s0 + $0x140] sm:$0xf0]  ;;  %v1429_v2 = vld [vmem:[%s2096_s0 + $0x144] sm:$0xf0] }
  0x82   :  { %855 = vmatmul.bf16.gmra.mxu3 %v1067_v1  ;;  %v1166_v1 = vld [vmem:[%s2096_s0 + $0x130] sm:$0xf]  ;;  %v1163_v9 = vor.u32 %v1425_v63, %v1160_v0 }
  0x83   :  { %v1167_v10 = vor.u32 %v1429_v2, %v1166_v1 }
  0x84   :  { %953 = vmatmul.bf16.gmra.mxu1 %v1075_v3 }
  0x91   :  { %811 = vmatmul.bf16.gmra.mxu2 %v1087_v12  ;;  %909 = vmatmul.bf16.gmra.mxu0 %v1095_v14 }
  0x92   :  { %860 = vmatmul.bf16.gmra.mxu3 %v1091_v13  ;;  %v1171_v13 = vor.u32 %v1426_v5, %v1168_v6 }
  0x94   :  { %958 = vmatmul.bf16.gmra.mxu1 %v1099_v15 }
  0x9e   :  { %v1881_v27 = vpop.f32.mrf.mxu0 }
  0xa1   :  { %v1883_v29 = vpop.f32.mrf.mxu1  ;;  %816 = vmatmul.bf16.gmra.mxu2 %v1111_v24  ;;  %914 = vmatmul.bf16.gmra.mxu0 %v1119_v26  ;;  %v1184_v24 = vld [vmem:[%s2096_s0 + $0x170] sm:$0xf0]  ;;  %v1435_v26 = vld [vmem:[%s2096_s0 + $0x174] sm:$0xf0] }
  0xa2   :  { %865 = vmatmul.bf16.gmra.mxu3 %v1115_v25  ;;  %v1190_v25 = vld [vmem:[%s2096_s0 + $0x160] sm:$0xf]  ;;  %v1187_v39 = vor.u32 %v1431_v23, %v1184_v24 }
  0xa3   :  { %v1191_v40 = vor.u32 %v1435_v26, %v1190_v25 }
  0xa4   :  { %963 = vmatmul.bf16.gmra.mxu1 %v1123_v28  ;;  %v719_v31 = vpop.f32.mrf.mxu2 }
  0xa5   :  { %v768_v32 = vpop.f32.mrf.mxu3  ;;  %v720_v33 = vadd.f32 %v1888_v30, %v719_v31 }
  0xa6   :  { %v1893_v35 = vpop.f32.mrf.mxu0 }
  0xa7   :  { %v1891_v34 = vadd.f32 %v768_v32, %v720_v33  ;;  %v1432_v32 = vld [vmem:[%s2096_s0 + $0x164] sm:$0xf]  ;;  %v1192_v33 = vld [vmem:[%s2096_s0 + $0x178] sm:$0xf0] }
  0xa9   :  { %v1895_v36 = vpop.f32.mrf.mxu1 }
  0xac   :  { %v721_v43 = vpop.f32.mrf.mxu2 }
  0xad   :  { %v770_v44 = vpop.f32.mrf.mxu3  ;;  %v722_v47 = vadd.f32 %v1888_v30, %v721_v43  ;;  %v1195_v43 = vor.u32 %v1432_v32, %v1192_v33 }
  0xae   :  { %v1924_v52 = vpop.f32.mrf.mxu0 }
  0xaf   :  { %v1922_v51 = vadd.f32 %v770_v44, %v722_v47 }
  0xb1   :  { %v1926_v54 = vpop.f32.mrf.mxu1  ;;  %821 = vmatmul.bf16.gmra.mxu2 %v1135_v48  ;;  %919 = vmatmul.bf16.gmra.mxu0 %v1143_v50 }
  0xb2   :  { %870 = vmatmul.bf16.gmra.mxu3 %v1139_v49 }
  0xb4   :  { %968 = vmatmul.bf16.gmra.mxu1 %v1147_v53  ;;  %v724_v55 = vpop.f32.mrf.mxu2 }
  0xb5   :  { %v773_v56 = vpop.f32.mrf.mxu3  ;;  %v725_v57 = vadd.f32 %v1888_v30, %v724_v55 }
  0xb6   :  { %v1931_v59 = vpop.f32.mrf.mxu0 }
  0xb7   :  { %v1929_v58 = vadd.f32 %v773_v56, %v725_v57  ;;  %v700_v57 = vadd.f32 %v1888_v30, %v1881_v27  ;;  %v707_v26 = vadd.f32 %v1888_v30, %v1931_v59 }
  0xb9   :  { %v1933_v60 = vpop.f32.mrf.mxu1  ;;  %v749_v0 = vadd.f32 %v1883_v29, %v700_v57 }
  0xba   :  { %v756_v33 = vadd.f32 %v1933_v60, %v707_v26 }
  0xbc   :  { %v726_v3 = vpop.f32.mrf.mxu2 }
  0xbd   :  { %v775_v4 = vpop.f32.mrf.mxu3  ;;  %v727_v7 = vadd.f32 %v1888_v30, %v726_v3 }
  0xbe   :  { %v1962_v12 = vpop.f32.mrf.mxu0 }
  0xbf   :  { %v1960_v11 = vadd.f32 %v775_v4, %v727_v7  ;;  %v702_v4 = vadd.f32 %v1888_v30, %v1893_v35 }
  0xc1   :  { %v1964_v14 = vpop.f32.mrf.mxu1  ;;  %826 = vmatmul.bf16.gmra.mxu2 %v1159_v8  ;;  %924 = vmatmul.bf16.gmra.mxu0 %v1167_v10 }
  0xc2   :  { %875 = vmatmul.bf16.gmra.mxu3 %v1163_v9  ;;  %v751_v9 = vadd.f32 %v1895_v36, %v702_v4 }
  0xc4   :  { %973 = vmatmul.bf16.gmra.mxu1 %v1171_v13  ;;  %v729_v15 = vpop.f32.mrf.mxu2 }
  0xc5   :  { %v778_v16 = vpop.f32.mrf.mxu3  ;;  %v730_v17 = vadd.f32 %v1888_v30, %v729_v15  ;;  %v705_v15 = vadd.f32 %v1888_v30, %v1924_v52 }
  0xc6   :  { %v1969_v19 = vpop.f32.mrf.mxu0 }
  0xc7   :  { %v1967_v18 = vadd.f32 %v778_v16, %v730_v17  ;;  %v754_v22 = vadd.f32 %v1926_v54, %v705_v15  ;;  %v712_v57 = vadd.f32 %v1888_v30, %v1969_v19 }
  0xc9   :  { %v1971_v20 = vpop.f32.mrf.mxu1 }
  0xcc   :  { %v731_v28 = vpop.f32.mrf.mxu2 }
  0xcd   :  { %v780_v31 = vpop.f32.mrf.mxu3  ;;  %v732_v37 = vadd.f32 %v1888_v30, %v731_v28 }
  0xce   :  { %v2000_v42 = vpop.f32.mrf.mxu0 }
  0xcf   :  { %v1998_v41 = vadd.f32 %v780_v31, %v732_v37 }
  0xd1   :  { %v2002_v44 = vpop.f32.mrf.mxu1  ;;  %831 = vmatmul.bf16.gmra.mxu2 %v1183_v38  ;;  %929 = vmatmul.bf16.gmra.mxu0 %v1191_v40  ;;  %v710_v40 = vadd.f32 %v1888_v30, %v1962_v12 }
  0xd2   :  { %880 = vmatmul.bf16.gmra.mxu3 %v1187_v39 }
  0xd4   :  { %978 = vmatmul.bf16.gmra.mxu1 %v1195_v43  ;;  %v734_v45 = vpop.f32.mrf.mxu2 }
  0xd5   :  { %v783_v46 = vpop.f32.mrf.mxu3  ;;  %v735_v47 = vadd.f32 %v1888_v30, %v734_v45 }
  0xd6   :  { %v2007_v49 = vpop.f32.mrf.mxu0 }
  0xd7   :  { %v2005_v48 = vadd.f32 %v783_v46, %v735_v47  ;;  %v759_v47 = vadd.f32 %v1964_v14, %v710_v40 }
  0xd9   :  { %v2009_v50 = vpop.f32.mrf.mxu1 }
  0xdc   :  { %v736_v53 = vpop.f32.mrf.mxu2 }
  0xdd   :  { %v785_v55 = vpop.f32.mrf.mxu3  ;;  %v737_v56 = vadd.f32 %v1888_v30, %v736_v53 }
  0xde   :  { %v895_v62 = vpop.f32.mrf.mxu0 }
  0xdf   :  { %v2014_v61 = vadd.f32 %v785_v55, %v737_v56 }
  0xe1   :  { %v944_v63 = vpop.f32.mrf.mxu1 }
  0xe4   :  { %v797_v1 = vpop.f32.mrf.mxu2 }
  0xe5   :  { %v846_v2 = vpop.f32.mrf.mxu3  ;;  %v798_v3 = vadd.f32 %v797_v1, %v749_v0  ;;  %v761_v1 = vadd.f32 %v1971_v20, %v712_v57 }
  0xe6   :  { %v897_v6 = vpop.f32.mrf.mxu0 }
  0xe7   :  { %v847_v5 = vadd.f32 %v846_v2, %v798_v3 }
  0xe9   :  { %v946_v7 = vpop.f32.mrf.mxu1  ;;  %v896_v8 = vadd.f32 %v895_v62, %v847_v5  ;;  %v715_v5 = vadd.f32 %v1888_v30, %v2000_v42 }
  0xeb   :  { %v945_v10 = vadd.f32 %v944_v63, %v896_v8 }
  0xec   :  { %v799_v27 = vpop.f32.mrf.mxu2 }
  0xed   :  { %v848_v13 = vpop.f32.mrf.mxu3  ;;  %984 = vst [vmem:[%s2097_s3] sm:$0xff] %v945_v10  ;;  %v800_v29 = vadd.f32 %v799_v27, %v751_v9  ;;  %v764_v9 = vadd.f32 %v2002_v44, %v715_v5 }
  0xee   :  { %v900_v17 = vpop.f32.mrf.mxu0 }
  0xef   :  { %v849_v16 = vadd.f32 %v848_v13, %v800_v29  ;;  %v717_v29 = vadd.f32 %v1888_v30, %v2007_v49 }
  0xf1   :  { %v949_v35 = vpop.f32.mrf.mxu1  ;;  %v898_v21 = vadd.f32 %v897_v6, %v849_v16 }
  0xf3   :  { %v947_v23 = vadd.f32 %v946_v7, %v898_v21 }
  0xf4   :  { %v802_v24 = vpop.f32.mrf.mxu2 }
  0xf5   :  { %v851_v36 = vpop.f32.mrf.mxu3  ;;  %985 = vst [vmem:[%s2097_s3 + $0x8] sm:$0xff] %v947_v23  ;;  %v803_v25 = vadd.f32 %v802_v24, %v754_v22 }
  0xf6   :  { %v902_v31 = vpop.f32.mrf.mxu0 }
  0xf7   :  { %v852_v28 = vadd.f32 %v851_v36, %v803_v25 }
  0xf9   :  { %v951_v52 = vpop.f32.mrf.mxu1  ;;  %v901_v32 = vadd.f32 %v900_v17, %v852_v28 }
  0xfb   :  { %v950_v37 = vadd.f32 %v949_v35, %v901_v32  ;;  %v766_v35 = vadd.f32 %v2009_v50, %v717_v29 }
  0xfc   :  { %v804_v38 = vpop.f32.mrf.mxu2 }
  0xfd   :  { %v853_v54 = vpop.f32.mrf.mxu3  ;;  %986 = vst [vmem:[%s2097_s3 + $0x10] sm:$0xff] %v950_v37  ;;  %v805_v39 = vadd.f32 %v804_v38, %v756_v33 }
  0xfe   :  { %v905_v45 = vpop.f32.mrf.mxu0 }
  0xff   :  { %v854_v43 = vadd.f32 %v853_v54, %v805_v39 }
 0x101   :  { %v954_v59 = vpop.f32.mrf.mxu1  ;;  %v903_v46 = vadd.f32 %v902_v31, %v854_v43 }
 0x103   :  { %v952_v53 = vadd.f32 %v951_v52, %v903_v46 }
 0x104   :  { %v807_v55 = vpop.f32.mrf.mxu2 }
 0x105   :  { %v856_v60 = vpop.f32.mrf.mxu3  ;;  %987 = vst [vmem:[%s2097_s3 + $0x18] sm:$0xff] %v952_v53  ;;  %v808_v56 = vadd.f32 %v807_v55, %v759_v47 }
 0x106   :  { %v907_v63 = vpop.f32.mrf.mxu0 }
 0x107   :  { %v857_v62 = vadd.f32 %v856_v60, %v808_v56 }
 0x109   :  { %v956_v12 = vpop.f32.mrf.mxu1  ;;  %v906_v0 = vadd.f32 %v905_v45, %v857_v62 }
 0x10b   :  { %v955_v2 = vadd.f32 %v954_v59, %v906_v0 }
 0x10c   :  { %v809_v3 = vpop.f32.mrf.mxu2 }
 0x10d   :  { %v858_v14 = vpop.f32.mrf.mxu3  ;;  %988 = vst [vmem:[%s2097_s3 + $0x20] sm:$0xff] %v955_v2  ;;  %v810_v4 = vadd.f32 %v809_v3, %v761_v1 }
 0x10e   :  { %v910_v7 = vpop.f32.mrf.mxu0 }
 0x10f   :  { %v859_v6 = vadd.f32 %v858_v14, %v810_v4 }
 0x111   :  { %v959_v19 = vpop.f32.mrf.mxu1  ;;  %v908_v8 = vadd.f32 %v907_v63, %v859_v6 }
 0x113   :  { %v957_v10 = vadd.f32 %v956_v12, %v908_v8 }
 0x114   :  { %v812_v27 = vpop.f32.mrf.mxu2 }
 0x115   :  { %v861_v20 = vpop.f32.mrf.mxu3  ;;  %989 = vst [vmem:[%s2097_s3 + $0x28] sm:$0xff] %v957_v10  ;;  %v813_v13 = vadd.f32 %v812_v27, %v764_v9 }
 0x116   :  { %v912_v16 = vpop.f32.mrf.mxu0 }
 0x117   :  { %v862_v15 = vadd.f32 %v861_v20, %v813_v13 }
 0x119   :  { %v961_v42 = vpop.f32.mrf.mxu1  ;;  %v911_v17 = vadd.f32 %v910_v7, %v862_v15 }
 0x11b   :  { %v960_v21 = vadd.f32 %v959_v19, %v911_v17 }
 0x11c   :  { %v814_v22 = vpop.f32.mrf.mxu2 }
 0x11d   :  { %v863_v44 = vpop.f32.mrf.mxu3  ;;  %990 = vst [vmem:[%s2097_s3 + $0x30] sm:$0xff] %v960_v21  ;;  %v815_v23 = vadd.f32 %v814_v22, %v766_v35 }
 0x11e   :  { %v915_v36 = vpop.f32.mrf.mxu0 }
 0x11f   :  { %v864_v24 = vadd.f32 %v863_v44, %v815_v23 }
 0x121   :  { %v964_v25 = vpop.f32.mrf.mxu1  ;;  %v913_v26 = vadd.f32 %v912_v16, %v864_v24 }
 0x123   :  { %v962_v28 = vadd.f32 %v961_v42, %v913_v26 }
 0x124   :  { %v817_v30 = vpop.f32.mrf.mxu2 }
 0x125   :  { %v866_v49 = vpop.f32.mrf.mxu3  ;;  %991 = vst [vmem:[%s2097_s3 + $0x38] sm:$0xff] %v962_v28  ;;  %v818_v50 = vadd.f32 %v817_v30, %v1891_v34 }
 0x126   :  { %v917_v52 = vpop.f32.mrf.mxu0 }
 0x127   :  { %v867_v31 = vadd.f32 %v866_v49, %v818_v50 }
 0x129   :  { %v966_v32 = vpop.f32.mrf.mxu1  ;;  %v916_v33 = vadd.f32 %v915_v36, %v867_v31 }
 0x12b   :  { %v965_v37 = vadd.f32 %v964_v25, %v916_v33 }
 0x12c   :  { %v819_v38 = vpop.f32.mrf.mxu2 }
 0x12d   :  { %v868_v54 = vpop.f32.mrf.mxu3  ;;  %992 = vst [vmem:[%s2097_s3 + $0x40] sm:$0xff] %v965_v37  ;;  %v820_v39 = vadd.f32 %v819_v38, %v1922_v51 }
 0x12e   :  { %v920_v43 = vpop.f32.mrf.mxu0 }
 0x12f   :  { %v869_v40 = vadd.f32 %v868_v54, %v820_v39 }
 0x131   :  { %v969_v45 = vpop.f32.mrf.mxu1  ;;  %v918_v59 = vadd.f32 %v917_v52, %v869_v40 }
 0x133   :  { %v967_v46 = vadd.f32 %v966_v32, %v918_v59 }
 0x134   :  { %v822_v47 = vpop.f32.mrf.mxu2 }
 0x135   :  { %v871_v34 = vpop.f32.mrf.mxu3  ;;  %993 = vst [vmem:[%s2097_s3 + $0x48] sm:$0xff] %v967_v46  ;;  %v823_v53 = vadd.f32 %v822_v47, %v1929_v58 }
 0x136   :  { %v922_v60 = vpop.f32.mrf.mxu0 }
 0x137   :  { %v872_v55 = vadd.f32 %v871_v34, %v823_v53 }
 0x139   :  { %v921_v56 = vadd.f32 %v920_v43, %v872_v55  ;;  %v971_v57 = vpop.f32.mrf.mxu1 }
 0x13b   :  { %v970_v62 = vadd.f32 %v969_v45, %v921_v56 }
 0x13c   :  { %v824_v63 = vpop.f32.mrf.mxu2 }
 0x13d   :  { %v873_v51 = vpop.f32.mrf.mxu3  ;;  %994 = vst [vmem:[%s2097_s3 + $0x50] sm:$0xff] %v970_v62  ;;  %v825_v12 = vadd.f32 %v824_v63, %v1960_v11 }
 0x13e   :  { %v925_v2 = vpop.f32.mrf.mxu0 }
 0x13f   :  { %v874_v0 = vadd.f32 %v873_v51, %v825_v12 }
 0x141   :  { %v923_v1 = vadd.f32 %v922_v60, %v874_v0  ;;  %v974_v14 = vpop.f32.mrf.mxu1 }
 0x143   :  { %v972_v3 = vadd.f32 %v971_v57, %v923_v1 }
 0x144   :  { %v827_v4 = vpop.f32.mrf.mxu2 }
 0x145   :  { %v876_v58 = vpop.f32.mrf.mxu3  ;;  %995 = vst [vmem:[%s2097_s3 + $0x58] sm:$0xff] %v972_v3  ;;  %v828_v5 = vadd.f32 %v827_v4, %v1967_v18 }
 0x146   :  { %v927_v8 = vpop.f32.mrf.mxu0 }
 0x147   :  { %v877_v6 = vadd.f32 %v876_v58, %v828_v5 }
 0x149   :  { %v926_v7 = vadd.f32 %v925_v2, %v877_v6  ;;  %v976_v27 = vpop.f32.mrf.mxu1 }
 0x14b   :  { %v975_v19 = vadd.f32 %v974_v14, %v926_v7 }
 0x14c   :  { %v829_v9 = vpop.f32.mrf.mxu2 }
 0x14d   :  { %v878_v10 = vpop.f32.mrf.mxu3  ;;  %996 = vst [vmem:[%s2097_s3 + $0x60] sm:$0xff] %v975_v19  ;;  %v830_v11 = vadd.f32 %v829_v9, %v1998_v41 }
 0x14e   :  { %v930_v42 = vpop.f32.mrf.mxu0 }
 0x14f   :  { %v879_v20 = vadd.f32 %v878_v10, %v830_v11 }
 0x151   :  { %v928_v13 = vadd.f32 %v927_v8, %v879_v20  ;;  %v979_v35 = vpop.f32.mrf.mxu1 }
 0x153   :  { %v977_v29 = vadd.f32 %v976_v27, %v928_v13 }
 0x154   :  { %v832_v15 = vpop.f32.mrf.mxu2 }
 0x155   :  { %v881_v16 = vpop.f32.mrf.mxu3  ;;  %997 = vst [vmem:[%s2097_s3 + $0x68] sm:$0xff] %v977_v29  ;;  %v833_v18 = vadd.f32 %v832_v15, %v2005_v48 }
 0x156   :  { %v932_v36 = vpop.f32.mrf.mxu0 }
 0x157   :  { %v882_v17 = vadd.f32 %v881_v16, %v833_v18 }
 0x159   :  { %v931_v21 = vadd.f32 %v930_v42, %v882_v17  ;;  %v981_v26 = vpop.f32.mrf.mxu1 }
 0x15b   :  { %v980_v22 = vadd.f32 %v979_v35, %v931_v21 }
 0x15c   :  { %v834_v44 = vpop.f32.mrf.mxu2 }
 0x15d   :  { %998 = vst [vmem:[%s2097_s3 + $0x70] sm:$0xff] %v980_v22  ;;  %v835_v41 = vadd.f32 %v834_v44, %v2014_v61  ;;  %v883_v23 = vpop.f32.mrf.mxu3 }
 0x15f   :  { %v884_v24 = vadd.f32 %v883_v23, %v835_v41 }
 0x161   :  { %v933_v25 = vadd.f32 %v932_v36, %v884_v24 }
 0x163   :  { %v982_v28 = vadd.f32 %v981_v26, %v933_v25 }
 0x165   :  { %999 = vst [vmem:[%s2097_s3 + $0x78] sm:$0xff] %v982_v28 }

</bundles_post_ra>
